<compile_context>
chip_gen: v6e
topology: v6e:2x2x1
jax: 0.10.0
libtpu: 0.0.40
codegen_flags: <defaults>
</compile_context>

<pallas_src>
import math

import jax
import jax.numpy as jnp
from jax.experimental import pallas as pl
from jax.experimental.pallas import tpu as pltpu


def _vmem_limit_bytes():
    """Per-generation VMEM limit: ~3/4 of physical capacity, capped at 100 MiB.

    Gives ~96 MiB on v5e/v6e (128 MiB physical) and ~48 MiB on v7x (64 MiB).
    """
    try:
        cap = pltpu.get_tpu_info().vmem_capacity_bytes
    except Exception:
        cap = 128 * 1024 * 1024
    return int(min(cap * 3 // 4, 100 * 1024 * 1024))


def _qkv_proj_kernel(x_ref, wq_ref, bq_ref, wk_ref, bk_ref, wv_ref, bv_ref,
                     q_ref, k_ref, v_ref):
    """grid=(B, H): per-head q/k/v projections, each FLOP done exactly once."""
    x = x_ref[...]                                             # (N, E) bf16
    q = jnp.dot(x, wq_ref[...], preferred_element_type=jnp.float32) + bq_ref[...]
    k = jnp.dot(x, wk_ref[...], preferred_element_type=jnp.float32) + bk_ref[...]
    v = jnp.dot(x, wv_ref[...], preferred_element_type=jnp.float32) + bv_ref[...]
    q_ref[...] = q.astype(q_ref.dtype)                         # (N, D) bf16
    k_ref[...] = k.astype(k_ref.dtype)
    v_ref[...] = v.astype(v_ref.dtype)


def _flash_attn_kernel(q_ref, k_ref, v_ref, wo_ref, bo_ref, o_ref,
                       acc_ref, m_ref, l_ref, hacc_ref):
    """grid=(B, n_q, H, n_kv): online-softmax attention + fused out-projection."""
    h = pl.program_id(2)
    kv = pl.program_id(3)
    last_h = pl.num_programs(2) - 1
    last_kv = pl.num_programs(3) - 1

    @pl.when(jnp.logical_and(h == 0, kv == 0))
    def _():
        # Initialize the (TQ, E) output accumulator with the projection bias.
        acc_ref[...] = jnp.broadcast_to(bo_ref[...], acc_ref.shape).astype(jnp.float32)

    @pl.when(kv == 0)
    def _():
        m_ref[...] = jnp.full_like(m_ref, -jnp.inf)
        l_ref[...] = jnp.zeros_like(l_ref)
        hacc_ref[...] = jnp.zeros_like(hacc_ref)

    q = q_ref[...]                                             # (TQ, D) bf16, pre-scaled
    k = k_ref[...]                                             # (TK, D) bf16
    v = v_ref[...]                                             # (TK, D) bf16

    # Scores: contract the shared D axis.
    # TODO(synk): if profiling shows an XLU relayout here, store K transposed
    # (B, H, D, N) once in the projection kernel instead.
    s = jax.lax.dot_general(q, k, (((1,), (1,)), ((), ())),
                            preferred_element_type=jnp.float32)  # (TQ, TK)

    # Online (flash) softmax update.
    m_prev = m_ref[...]
    m_new = jnp.maximum(m_prev, jnp.max(s, axis=-1, keepdims=True))
    alpha = jnp.exp(m_prev - m_new)
    p = jnp.exp(s - m_new)
    l_ref[...] = alpha * l_ref[...] + jnp.sum(p, axis=-1, keepdims=True)
    hacc_ref[...] = alpha * hacc_ref[...] + jnp.dot(
        p.astype(jnp.bfloat16), v, preferred_element_type=jnp.float32)
    m_ref[...] = m_new

    @pl.when(kv == last_kv)
    def _():
        # Finish this head and fuse the concat + output projection:
        #   acc += (att @ v_h) @ wo[h]
        inv_l = pl.reciprocal(l_ref[...], approx=True)
        head_out = (hacc_ref[...] * inv_l).astype(jnp.bfloat16)   # (TQ, D)
        wo_h = wo_ref[h]                                          # (D, E) bf16, resident
        acc_ref[...] += jnp.dot(head_out, wo_h,
                                preferred_element_type=jnp.float32)

    @pl.when(jnp.logical_and(h == last_h, kv == last_kv))
    def _():
        o_ref[...] = acc_ref[...].astype(o_ref.dtype)


def multi_head_attention(x, params, num_heads, tile_q=None, tile_kv=None):
    """x: (B, N, E) float32. params: dict of (E, E) weights and (1, E) biases."""
    B, N, E = x.shape
    H = num_heads
    assert E % H == 0
    D = E // H

    if tile_q is None:
        tile_q = min(N, 256)      # 256 feeds the 256-wide MXU on v6e/v7x
    if tile_kv is None:
        tile_kv = min(N, 512)
    assert N % tile_q == 0 and N % tile_kv == 0
    n_q, n_kv = N // tile_q, N // tile_kv

    inv_scale = 1.0 / math.sqrt(float(E))   # module uses emb_size ** 0.5

    # One-time constant transforms (a real model would store weights this way):
    #   * per-head lane-aligned (H, E, D) / (H, D, E) weight tiles,
    #   * softmax 1/sqrt(E) folded into wq / bq,
    #   * MXU-input weights pre-cast to bf16 (biases stay f32 — added post-matmul).
    def split_cols(w):   # (E, E) -> (H, E, D): output columns per head
        return jnp.transpose(w.reshape(E, H, D), (1, 0, 2))

    def split_bias(b):   # (1, E) -> (H, 1, D)
        return jnp.transpose(b.reshape(1, H, D), (1, 0, 2))

    wq_h = split_cols(params["wq"] * inv_scale).astype(jnp.bfloat16)
    bq_h = split_bias(params["bq"] * inv_scale)
    wk_h = split_cols(params["wk"]).astype(jnp.bfloat16)
    bk_h = split_bias(params["bk"])
    wv_h = split_cols(params["wv"]).astype(jnp.bfloat16)
    bv_h = split_bias(params["bv"])
    wo_h = params["wo"].reshape(H, D, E).astype(jnp.bfloat16)
    bo = params["bo"]                                              # (1, E) f32

    x_bf = x.astype(jnp.bfloat16)
    vmem_limit = _vmem_limit_bytes()

    # ------------ pallas_call 1: QKV projection (no recompute). ------------
    w_spec = pl.BlockSpec((pl.Squeezed(), E, D), lambda b, h: (h, 0, 0))
    b_spec = pl.BlockSpec((pl.Squeezed(), 1, D), lambda b, h: (h, 0, 0))
    qkv_spec = pl.BlockSpec((pl.Squeezed(), pl.Squeezed(), N, D),
                            lambda b, h: (b, h, 0, 0))
    proj_cost = pl.CostEstimate(
        flops=6 * B * N * E * E,
        transcendentals=0,
        bytes_accessed=2 * B * N * E + 6 * B * E * E + 6 * B * N * E)

    q, k, v = pl.pallas_call(
        _qkv_proj_kernel,
        out_shape=tuple(jax.ShapeDtypeStruct((B, H, N, D), jnp.bfloat16)
                        for _ in range(3)),
        grid_spec=pltpu.PrefetchScalarGridSpec(
            num_scalar_prefetch=0,
            grid=(B, H),
            in_specs=[
                pl.BlockSpec((pl.Squeezed(), N, E), lambda b, h: (b, 0, 0)),
                w_spec, b_spec,    # queries (scale folded in)
                w_spec, b_spec,    # keys
                w_spec, b_spec,    # values
            ],
            out_specs=(qkv_spec, qkv_spec, qkv_spec),
        ),
        compiler_params=pltpu.CompilerParams(
            dimension_semantics=("parallel", "arbitrary"),
            vmem_limit_bytes=vmem_limit),
        cost_estimate=proj_cost,
    )(x_bf, wq_h, bq_h, wk_h, bk_h, wv_h, bv_h)

    # ---- pallas_call 2: flash attention + fused concat/output projection. ----
    q_spec = pl.BlockSpec((pl.Squeezed(), pl.Squeezed(), tile_q, D),
                          lambda b, qi, h, ki: (b, h, qi, 0))
    kv_spec = pl.BlockSpec((pl.Squeezed(), pl.Squeezed(), tile_kv, D),
                           lambda b, qi, h, ki: (b, h, ki, 0))
    # Constant index_maps: wo/bo are DMAed once and stay VMEM-resident.
    wo_spec = pl.BlockSpec((H, D, E), lambda b, qi, h, ki: (0, 0, 0))
    bo_spec = pl.BlockSpec((1, E), lambda b, qi, h, ki: (0, 0))
    out_spec = pl.BlockSpec((pl.Squeezed(), tile_q, E),
                            lambda b, qi, h, ki: (b, qi, 0))

    attn_cost = pl.CostEstimate(
        flops=4 * B * N * N * E + 2 * B * N * E * E,
        transcendentals=B * H * N * (N + n_kv + 1),
        bytes_accessed=(2 * B * N * E            # q (bf16)
                        + 4 * B * N * E * n_q    # k, v re-read per q tile (bf16)
                        + 2 * E * E + 4 * E      # wo, bo (single fetch)
                        + 4 * B * N * E))        # f32 output

    return pl.pallas_call(
        _flash_attn_kernel,
        out_shape=jax.ShapeDtypeStruct((B, N, E), x.dtype),
        grid_spec=pltpu.PrefetchScalarGridSpec(
            num_scalar_prefetch=0,
            grid=(B, n_q, H, n_kv),
            in_specs=[q_spec, kv_spec, kv_spec, wo_spec, bo_spec],
            out_specs=out_spec,
            scratch_shapes=[
                pltpu.VMEM((tile_q, E), jnp.float32),   # fused-output accumulator
                pltpu.VMEM((tile_q, 1), jnp.float32),   # running max
                pltpu.VMEM((tile_q, 1), jnp.float32),   # running sum
                pltpu.VMEM((tile_q, D), jnp.float32),   # per-head accumulator
            ],
        ),
        compiler_params=pltpu.CompilerParams(
            dimension_semantics=("parallel", "parallel", "arbitrary", "arbitrary"),
            vmem_limit_bytes=vmem_limit),
        cost_estimate=attn_cost,
    )(q, k, v, wo_h, bo)


def reference_mha(x, params, num_heads):
    """Pure-JAX f32 reference mirroring the PyTorch forward (mask=None, eval)."""
    B, N, E = x.shape
    D = E // num_heads

    def proj(w, b):
        return x @ w + b  # (B, N, E)

    def split_heads(t):  # 'b n (h d) -> b h n d'
        return t.reshape(B, N, num_heads, D).transpose(0, 2, 1, 3)

    q = split_heads(proj(params["wq"], params["bq"]))
    k = split_heads(proj(params["wk"], params["bk"]))
    v = split_heads(proj(params["wv"], params["bv"]))
    energy = jnp.einsum("bhqd,bhkd->bhqk", q, k)
    att = jax.nn.softmax(energy / math.sqrt(E), axis=-1)
    out = jnp.einsum("bhal,bhlv->bhav", att, v)
    out = out.transpose(0, 2, 1, 3).reshape(B, N, E)  # 'b h n d -> b n (h d)'
    return out @ params["wo"] + params["bo"]


if __name__ == "__main__":
    B, N, E, H = 2, 8, 32, 4  # batch, seq, emb_size, num_heads

    key = jax.random.PRNGKey(0)
    keys = jax.random.split(key, 10)
    scale = 1.0 / math.sqrt(E)

    params = {
        "wq": jax.random.uniform(keys[0], (E, E), jnp.float32, -scale, scale),
        "bq": jax.random.uniform(keys[1], (1, E), jnp.float32, -scale, scale),
        "wk": jax.random.uniform(keys[2], (E, E), jnp.float32, -scale, scale),
        "bk": jax.random.uniform(keys[3], (1, E), jnp.float32, -scale, scale),
        "wv": jax.random.uniform(keys[4], (E, E), jnp.float32, -scale, scale),
        "bv": jax.random.uniform(keys[5], (1, E), jnp.float32, -scale, scale),
        "wo": jax.random.uniform(keys[6], (E, E), jnp.float32, -scale, scale),
        "bo": jax.random.uniform(keys[7], (1, E), jnp.float32, -scale, scale),
    }
    x = jax.random.normal(keys[8], (B, N, E), jnp.float32)

    out = multi_head_attention(x, params, H)
    out = jax.block_until_ready(out)

    ref = reference_mha(x, params, H)
    assert out.shape == (B, N, E)
    # bf16 MXU inputs / bf16 intermediate q,k,v + approx reciprocal => compare
    # to the f32 reference at bf16-level tolerance.
    assert jnp.allclose(out, ref, atol=2e-2, rtol=2e-2), "mismatch vs JAX reference"

    print("KERNEL_OK")
</pallas_src>

<mosaic_0001>
module attributes {stable_mosaic.version = 11 : i64} {
  func.func @_qkv_proj_kernel(%arg0: i32, %arg1: i32, %arg2: memref<1x8x32xbf16, #tpu.memory_space<vmem>>, %arg3: memref<1x32x8xbf16, #tpu.memory_space<vmem>>, %arg4: memref<1x1x8xf32, #tpu.memory_space<vmem>>, %arg5: memref<1x32x8xbf16, #tpu.memory_space<vmem>>, %arg6: memref<1x1x8xf32, #tpu.memory_space<vmem>>, %arg7: memref<1x32x8xbf16, #tpu.memory_space<vmem>>, %arg8: memref<1x1x8xf32, #tpu.memory_space<vmem>>, %arg9: memref<1x1x8x8xbf16, #tpu.memory_space<vmem>>, %arg10: memref<1x1x8x8xbf16, #tpu.memory_space<vmem>>, %arg11: memref<1x1x8x8xbf16, #tpu.memory_space<vmem>>) attributes {dimension_semantics = [#tpu.dimension_semantics<parallel>, #tpu.dimension_semantics<arbitrary>], iteration_bounds = array<i64: 2, 4>, scalar_prefetch = 0 : i64, scratch_operands = 0 : i64, tpu.core_type = #tpu.core_type<tc>, window_params = [{transform_indices = @transform_0, window_bounds = array<i64: 1, 8, 32>}, {transform_indices = @transform_1, window_bounds = array<i64: 1, 32, 8>}, {transform_indices = @transform_2, window_bounds = array<i64: 1, 1, 8>}, {transform_indices = @transform_3, window_bounds = array<i64: 1, 32, 8>}, {transform_indices = @transform_4, window_bounds = array<i64: 1, 1, 8>}, {transform_indices = @transform_5, window_bounds = array<i64: 1, 32, 8>}, {transform_indices = @transform_6, window_bounds = array<i64: 1, 1, 8>}, {transform_indices = @transform_7, window_bounds = array<i64: 1, 1, 8, 8>}, {transform_indices = @transform_8, window_bounds = array<i64: 1, 1, 8, 8>}, {transform_indices = @transform_9, window_bounds = array<i64: 1, 1, 8, 8>}]} {
    %c0 = arith.constant 0 : index
    %c0_0 = arith.constant 0 : index
    %c0_1 = arith.constant 0 : index
    %0 = vector.load %arg2[%c0, %c0_0, %c0_1] : memref<1x8x32xbf16, #tpu.memory_space<vmem>>, vector<1x8x32xbf16>
    %1 = vector.shape_cast %0 : vector<1x8x32xbf16> to vector<8x32xbf16>
    %c0_2 = arith.constant 0 : index
    %c0_3 = arith.constant 0 : index
    %c0_4 = arith.constant 0 : index
    %2 = vector.load %arg3[%c0_2, %c0_3, %c0_4] : memref<1x32x8xbf16, #tpu.memory_space<vmem>>, vector<1x32x8xbf16>
    %3 = vector.shape_cast %2 : vector<1x32x8xbf16> to vector<32x8xbf16>
    %cst = arith.constant dense<0.000000e+00> : vector<8x8xf32>
    %4 = tpu.matmul %1, %3, %cst {dimension_numbers = #tpu.dot_dimension_numbers<[1], [0], [0], [1], [0, 0, 1, 1], [], []>} : vector<8x32xbf16>, vector<32x8xbf16>, vector<8x8xf32> -> vector<8x8xf32>
    %c0_5 = arith.constant 0 : index
    %c0_6 = arith.constant 0 : index
    %c0_7 = arith.constant 0 : index
    %5 = vector.load %arg4[%c0_5, %c0_6, %c0_7] : memref<1x1x8xf32, #tpu.memory_space<vmem>>, vector<1x1x8xf32>
    %6 = vector.shape_cast %5 : vector<1x1x8xf32> to vector<1x8xf32>
    %7 = vector.broadcast %6 : vector<1x8xf32> to vector<8x8xf32>
    %8 = arith.addf %4, %7 : vector<8x8xf32>
    %c0_8 = arith.constant 0 : index
    %c0_9 = arith.constant 0 : index
    %c0_10 = arith.constant 0 : index
    %9 = vector.load %arg5[%c0_8, %c0_9, %c0_10] : memref<1x32x8xbf16, #tpu.memory_space<vmem>>, vector<1x32x8xbf16>
    %10 = vector.shape_cast %9 : vector<1x32x8xbf16> to vector<32x8xbf16>
    %cst_11 = arith.constant dense<0.000000e+00> : vector<8x8xf32>
    %11 = tpu.matmul %1, %10, %cst_11 {dimension_numbers = #tpu.dot_dimension_numbers<[1], [0], [0], [1], [0, 0, 1, 1], [], []>} : vector<8x32xbf16>, vector<32x8xbf16>, vector<8x8xf32> -> vector<8x8xf32>
    %c0_12 = arith.constant 0 : index
    %c0_13 = arith.constant 0 : index
    %c0_14 = arith.constant 0 : index
    %12 = vector.load %arg6[%c0_12, %c0_13, %c0_14] : memref<1x1x8xf32, #tpu.memory_space<vmem>>, vector<1x1x8xf32>
    %13 = vector.shape_cast %12 : vector<1x1x8xf32> to vector<1x8xf32>
    %14 = vector.broadcast %13 : vector<1x8xf32> to vector<8x8xf32>
    %15 = arith.addf %11, %14 : vector<8x8xf32>
    %c0_15 = arith.constant 0 : index
    %c0_16 = arith.constant 0 : index
    %c0_17 = arith.constant 0 : index
    %16 = vector.load %arg7[%c0_15, %c0_16, %c0_17] : memref<1x32x8xbf16, #tpu.memory_space<vmem>>, vector<1x32x8xbf16>
    %17 = vector.shape_cast %16 : vector<1x32x8xbf16> to vector<32x8xbf16>
    %cst_18 = arith.constant dense<0.000000e+00> : vector<8x8xf32>
    %18 = tpu.matmul %1, %17, %cst_18 {dimension_numbers = #tpu.dot_dimension_numbers<[1], [0], [0], [1], [0, 0, 1, 1], [], []>} : vector<8x32xbf16>, vector<32x8xbf16>, vector<8x8xf32> -> vector<8x8xf32>
    %c0_19 = arith.constant 0 : index
    %c0_20 = arith.constant 0 : index
    %c0_21 = arith.constant 0 : index
    %19 = vector.load %arg8[%c0_19, %c0_20, %c0_21] : memref<1x1x8xf32, #tpu.memory_space<vmem>>, vector<1x1x8xf32>
    %20 = vector.shape_cast %19 : vector<1x1x8xf32> to vector<1x8xf32>
    %21 = vector.broadcast %20 : vector<1x8xf32> to vector<8x8xf32>
    %22 = arith.addf %18, %21 : vector<8x8xf32>
    %23 = arith.truncf %8 : vector<8x8xf32> to vector<8x8xbf16>
    %c0_22 = arith.constant 0 : index
    %c0_23 = arith.constant 0 : index
    %c0_24 = arith.constant 0 : index
    %c0_25 = arith.constant 0 : index
    %24 = vector.load %arg9[%c0_22, %c0_23, %c0_24, %c0_25] : memref<1x1x8x8xbf16, #tpu.memory_space<vmem>>, vector<1x1x8x8xbf16>
    %25 = vector.shape_cast %24 : vector<1x1x8x8xbf16> to vector<8x8xbf16>
    %26 = vector.shape_cast %23 : vector<8x8xbf16> to vector<1x1x8x8xbf16>
    tpu.vector_store %arg9[%c0_22, %c0_23, %c0_24, %c0_25], %26 {strides = array<i32>} : memref<1x1x8x8xbf16, #tpu.memory_space<vmem>>, vector<1x1x8x8xbf16>,
    %27 = arith.truncf %15 : vector<8x8xf32> to vector<8x8xbf16>
    %c0_26 = arith.constant 0 : index
    %c0_27 = arith.constant 0 : index
    %c0_28 = arith.constant 0 : index
    %c0_29 = arith.constant 0 : index
    %28 = vector.load %arg10[%c0_26, %c0_27, %c0_28, %c0_29] : memref<1x1x8x8xbf16, #tpu.memory_space<vmem>>, vector<1x1x8x8xbf16>
    %29 = vector.shape_cast %28 : vector<1x1x8x8xbf16> to vector<8x8xbf16>
    %30 = vector.shape_cast %27 : vector<8x8xbf16> to vector<1x1x8x8xbf16>
    tpu.vector_store %arg10[%c0_26, %c0_27, %c0_28, %c0_29], %30 {strides = array<i32>} : memref<1x1x8x8xbf16, #tpu.memory_space<vmem>>, vector<1x1x8x8xbf16>,
    %31 = arith.truncf %22 : vector<8x8xf32> to vector<8x8xbf16>
    %c0_30 = arith.constant 0 : index
    %c0_31 = arith.constant 0 : index
    %c0_32 = arith.constant 0 : index
    %c0_33 = arith.constant 0 : index
    %32 = vector.load %arg11[%c0_30, %c0_31, %c0_32, %c0_33] : memref<1x1x8x8xbf16, #tpu.memory_space<vmem>>, vector<1x1x8x8xbf16>
    %33 = vector.shape_cast %32 : vector<1x1x8x8xbf16> to vector<8x8xbf16>
    %34 = vector.shape_cast %31 : vector<8x8xbf16> to vector<1x1x8x8xbf16>
    tpu.vector_store %arg11[%c0_30, %c0_31, %c0_32, %c0_33], %34 {strides = array<i32>} : memref<1x1x8x8xbf16, #tpu.memory_space<vmem>>, vector<1x1x8x8xbf16>,
    return
  }
  func.func @transform_0(%arg0: i32, %arg1: i32) -> (i32, i32, i32) {
    %c0_i32 = arith.constant 0 : i32
    %c0_i32_0 = arith.constant 0 : i32
    %c0_i32_1 = arith.constant 0 : i32
    return %arg0, %c0_i32, %c0_i32_0 : i32, i32, i32
  }
  func.func @transform_1(%arg0: i32, %arg1: i32) -> (i32, i32, i32) {
    %c0_i32 = arith.constant 0 : i32
    %c0_i32_0 = arith.constant 0 : i32
    %c0_i32_1 = arith.constant 0 : i32
    return %arg1, %c0_i32, %c0_i32_0 : i32, i32, i32
  }
  func.func @transform_2(%arg0: i32, %arg1: i32) -> (i32, i32, i32) {
    %c0_i32 = arith.constant 0 : i32
    %c0_i32_0 = arith.constant 0 : i32
    %c0_i32_1 = arith.constant 0 : i32
    return %arg1, %c0_i32, %c0_i32_0 : i32, i32, i32
  }
  func.func @transform_3(%arg0: i32, %arg1: i32) -> (i32, i32, i32) {
    %c0_i32 = arith.constant 0 : i32
    %c0_i32_0 = arith.constant 0 : i32
    %c0_i32_1 = arith.constant 0 : i32
    return %arg1, %c0_i32, %c0_i32_0 : i32, i32, i32
  }
  func.func @transform_4(%arg0: i32, %arg1: i32) -> (i32, i32, i32) {
    %c0_i32 = arith.constant 0 : i32
    %c0_i32_0 = arith.constant 0 : i32
    %c0_i32_1 = arith.constant 0 : i32
    return %arg1, %c0_i32, %c0_i32_0 : i32, i32, i32
  }
  func.func @transform_5(%arg0: i32, %arg1: i32) -> (i32, i32, i32) {
    %c0_i32 = arith.constant 0 : i32
    %c0_i32_0 = arith.constant 0 : i32
    %c0_i32_1 = arith.constant 0 : i32
    return %arg1, %c0_i32, %c0_i32_0 : i32, i32, i32
  }
  func.func @transform_6(%arg0: i32, %arg1: i32) -> (i32, i32, i32) {
    %c0_i32 = arith.constant 0 : i32
    %c0_i32_0 = arith.constant 0 : i32
    %c0_i32_1 = arith.constant 0 : i32
    return %arg1, %c0_i32, %c0_i32_0 : i32, i32, i32
  }
  func.func @transform_7(%arg0: i32, %arg1: i32) -> (i32, i32, i32, i32) {
    %c0_i32 = arith.constant 0 : i32
    %c0_i32_0 = arith.constant 0 : i32
    %c0_i32_1 = arith.constant 0 : i32
    return %arg0, %arg1, %c0_i32, %c0_i32_0 : i32, i32, i32, i32
  }
  func.func @transform_8(%arg0: i32, %arg1: i32) -> (i32, i32, i32, i32) {
    %c0_i32 = arith.constant 0 : i32
    %c0_i32_0 = arith.constant 0 : i32
    %c0_i32_1 = arith.constant 0 : i32
    return %arg0, %arg1, %c0_i32, %c0_i32_0 : i32, i32, i32, i32
  }
  func.func @transform_9(%arg0: i32, %arg1: i32) -> (i32, i32, i32, i32) {
    %c0_i32 = arith.constant 0 : i32
    %c0_i32_0 = arith.constant 0 : i32
    %c0_i32_1 = arith.constant 0 : i32
    return %arg0, %arg1, %c0_i32, %c0_i32_0 : i32, i32, i32, i32
  }
}

</mosaic_0001>

<bundles_post_ra>
// kernel: tpu_custom_call.1
= control target key start
LH: loop header
LB: loop body
LE: loop exit
PB: predicated region body
PF: predicated region fallthrough
CT: control target
= control target key end

     0   :  { %15 = vsyncpa [#allocation3], 0  ;;  %s1535_s0 = inlined_call_operand.vmem [shape: bf16[2,8,32], index: 0, kind: input, shape index: {}]   ;;  %s1536_s1 = inlined_call_operand.vmem [shape: bf16[4,32,8], index: 1, kind: input, shape index: {}]   ;;  %s1537_s2 = inlined_call_operand.vmem [shape: f32[4,1,8], index: 2, kind: input, shape index: {}]   ;;  %s1538_s3 = inlined_call_operand.vmem [shape: bf16[4,32,8], index: 3, kind: input, shape index: {}]   ;;  %s1539_s4 = inlined_call_operand.vmem [shape: f32[4,1,8], index: 4, kind: input, shape index: {}]   ;;  %s1540_s5 = inlined_call_operand.vmem [shape: bf16[4,32,8], index: 5, kind: input, shape index: {}]   ;;  %s1541_s6 = inlined_call_operand.vmem [shape: f32[4,1,8], index: 6, kind: input, shape index: {}]   ;;  %s1542_s7 = inlined_call_operand.hbm [shape: bf16[2,4,8,8], index: 7, kind: output, shape index: {0}]   ;;  %s1543_s8 = inlined_call_operand.hbm [shape: bf16[2,4,8,8], index: 8, kind: output, shape index: {1}]   ;;  %s1544_s9 = inlined_call_operand.hbm [shape: bf16[2,4,8,8], index: 9, kind: output, shape index: {2}]  }
   0x1   :  { %17 = vsyncpa [#allocation3 + $0x1], 0 }
   0x2   :  { %18 = vsyncpa [#allocation5], 0 }
   0x3   :  { %20 = vsyncpa [#allocation5 + $0x1], 0  ;;  %s1292_s30 = smov 0   ;;  %s1294_s10 = smov 0  }
   0x4   :  { %s1296_s11 = smov 0   ;;  %s1298_s12 = smov 0  }
   0x5   :  { %s1300_s13 = smov 0   ;;  %s1302_s14 = smov 0  }
   0x6   :  { %s1304_s15 = smov 0   ;;  %s1306_s16 = smov 0  }
   0x7 LB: > { %1553 = sst [smem:[#allocation9_spill]] %s1215_s11  ;;  %s1546_s17 = sadd.s32 4294967295, %s1235_s16   ;;  %s1235_s16 = sphi %s1306_s16, %s26_s16   ;;  %s1231_s15 = sphi %s1304_s15, %s1570_s15   ;;  %s1227_s14 = sphi %s1302_s14, %s1569_s14   ;;  %s1223_s13 = sphi %s1300_s13, %s1568_s13   ;;  %s1219_s12 = sphi %s1298_s12, %s1567_s12   ;;  %s1215_s11 = sphi %s1296_s11, %s1566_s11   ;;  %s1211_s10 = sphi %s1294_s10, %s1572_s10   ;;  %s1207_s30 = sphi %s1292_s30, %s1571_s30  }
   0x8   : > { %1554 = sst [smem:[#allocation10_spill]] %s1227_s14  ;;  %s1545_s18 = sadd.s32 4294967294, %s1235_s16  }
   0x9   : > { %1555 = sst [smem:[#allocation11_spill]] %s1231_s15  ;;  %s35_s19 = sadd.s32 1, %s1227_s14 }
   0xa   : > { %p36_p0 = scmp.ge.s32.totalorder %s35_s19, 4  ;;  %s38_s20 = sadd.s32 1, %s1231_s15 }
   0xb   : > { %p239_p1 = scmp.ne.s32.totalorder %s1215_s11, %s1211_s10  ;;  %p240_p2 = scmp.eq.s32.totalorder %s1546_s17, 7 }
   0xc   : > { %s1574_s19 = smov (%p36_p0, %s35_s19), 0  ;;  %s1576_s20 = smov (!%p36_p0, %s38_s20), %s1231_s15 }
   0xd   : > { %1556 = sst [smem:[#allocation12_spill]] %s1574_s19  ;;  %s225_s21 = ssub.s32 %s1227_s14, %s1574_s19 }
   0xe   : > { %p1345_p3 = por %p240_p2, %p239_p1  ;;  %p40_p4 = scmp.ge.s32.totalorder %s1576_s20, 2 }
   0xf   : > { %p245_p5 = scmp.ne.s32.totalorder %s1211_s10, %s1207_s30  ;;  %p246_p6 = scmp.eq.s32.totalorder %s1545_s18, 7 }
  0x10   : > { %p928_p7 = scmp.ge.s32.totalorder %s1235_s16, 1  ;;  %s1578_s20 = smov (%p40_p4, %s1576_s20), 0 }
  0x11   : > { %1558 = sst [smem:[#allocation13_spill]] %s1578_s20  ;;  %p1356_p8 = por %p246_p6, %p245_p5 }
  0x12   : > { %p369_p9 = scmp.lt.s32.totalorder %s1235_s16, 9  ;;  %s224_s24 = ssub.s32 %s1231_s15, %s1578_s20 }
  0x13   : > { %s1559_s23 = scalar_select %p1356_p8, 1, 0 }
  0x14   : > { %s229_s25 = sadd.s32 1, %s1215_s11  ;;  %s226_s26 = sor.u32 %s225_s21, %s224_s24 }
  0x15   : > { %1560 = sst [smem:[#allocation14_spill]] %s1559_s23  ;;  %p370_p10 = pnand %p928_p7, %p369_p9 }
  0x16   : > { %p227_p11 = scmp.eq.s32.totalorder %s226_s26, 0  ;;  %p442_p12 = scmp.lt.s32.totalorder (!%p370_p10), %s1219_s12, 3 }
  0x17   : > { %373 = sbr.rel (%p370_p10) target bundleno = 296 (0x128), region = 48  ;;  %p438_p13 = scmp.lt.s32.totalorder (!%p370_p10), %s1223_s13, 1 }
  0x18   : > { %s1365_s27 = scalar_select %p227_p11, %s1215_s11, %s229_s25  }
  0x19   : > { %s421_s11 = sand.u32 (!%p370_p10), 1, %s1211_s10   ;;  %s954_s14 = sshll.u32 (!%p370_p10), %s1223_s13, 2 }
  0x1a   : > { %1561 = sst [smem:[#allocation15_spill]] %s1365_s27  ;;  %s669_s15 = scalar_lea.sflag (!%p370_p10), [#allocation3], %s421_s11 }
  0x1c   : > { %v1237_v0 = vmov 0.0   ;;  %s1370_s28 = scalar_select %p442_p12, %s1219_s12, 3  ;;  %vm1238_vm0 = vmmov 0   ;;  %vm491_vm1 = vcmask 261120   ;;  %vm662_vm2 = vcmask 60416  }
  0x1d   : > { %974 = vmatprep.subr.bf16.mxu0 %v1237_v0  ;;  %982 = vmatprep.subr.bf16.mxu1 %v1237_v0  ;;  %s439_s29 = scalar_select %p438_p13, %s1223_s13, 1 }
  0x1e   : > { %978 = vmatprep.mubr.msk.bf16.mxu0 %vm1238_vm0, %v1237_v0  ;;  %986 = vmatprep.mubr.msk.bf16.mxu1 %vm1238_vm0, %v1237_v0  ;;  %s962_s21 = sshll.u32 %s1370_s28, 4  ;;  %s449_s18 = scalar_lea.vmem %s1537_s2, %s1370_s28 }
  0x1f   : > { %s446_s26 = scalar_lea.vmem %s1536_s1, %s962_s21  ;;  %s454_s20 = scalar_lea.vmem %s1538_s3, %s962_s21  ;;  %v939_v8 = vld [vmem:[%s449_s18] ss:$0 sm:$0xff] }
  0x20   : > { %v1081_v1 = vld [vmem:[%s446_s26 + $0x8] sm:$0xff]   ;;  %s932_s19 = sshll.u32 %s439_s29, 2  ;;  %v1083_v3 = vld [vmem:[%s446_s26] sm:$0xff]   ;;  %s462_s27 = scalar_lea.vmem %s1540_s5, %s962_s21 }
  0x21   : > { %v1082_v2 = vld [vmem:[%s454_s20 + $0x8] sm:$0xff]   ;;  %975 = vmatpush3.bf16.msra.mxu0 %v1081_v1  ;;  %v1084_v4 = vld [vmem:[%s454_s20] sm:$0xff]   ;;  %s441_s24 = scalar_lea.vmem %s1535_s0, %s932_s19  ;;  %s457_s23 = scalar_lea.vmem %s1539_s4, %s1370_s28 }
  0x22   : > { %983 = vmatpush3.bf16.msra.mxu1 %v1082_v2  ;;  %976 = vmatprep.subr.bf16.mxu0 %v1237_v0  ;;  %v467_v5 = vld [vmem:[%s441_s24] sm:$0xf]  ;;  %v1085_v6 = vld [vmem:[%s462_s27 + $0x8] sm:$0xff]   ;;  %s1401_s29 = sshll.u32 %s421_s11, 2  ;;  %s1562_s21 = sadd.s32 4294967295, %s1235_s16  }
  0x23   : > { %984 = vmatprep.subr.bf16.mxu1 %v1237_v0  ;;  %v1086_v7 = vld [vmem:[%s462_s27] sm:$0xff]   ;;  %s690_s27 = sadd.s32 %s1219_s12, %s954_s14  ;;  %s1406_s25 = sand.u32 1, %s1562_s21  }
  0x24   : > { %v943_v9 = vld [vmem:[%s457_s23] ss:$0 sm:$0xff]  ;;  %s1408_s13 = sshll.u32 %s690_s27, 6  ;;  %s423_s26 = scalar_lea.vmem [#allocation2], %s1401_s29 }
  0x25   : > { %977 = vmatpush3.bf16.msra.mxu0 %v1083_v3  ;;  %s694_s24 = sshll.u32 %s423_s26, 4  ;;  %s465_s19 = scalar_lea.vmem %s1541_s6, %s1370_s28  ;;  %s1422_s24 = int_to_ptr.vmem [resolvable:$true] %s694_s24 }
  0x26   : > { %985 = vmatpush3.bf16.msra.mxu1 %v1084_v4  ;;  %990 = vmatprep.subr.bf16.mxu0 %v1237_v0  ;;  %s430_s20 = scalar_lea.vmem [#allocation4], %s1401_s29  ;;  %s1420_s23 = scalar_lea.hbm %s1542_s7, %s1408_s13  ;;  %v947_v21 = vld [vmem:[%s465_s19] ss:$0 sm:$0xff] }
  0x27   : > { %s709_s12 = sshll.u32 %s430_s20, 4  ;;  %s1428_s21 = scalar_lea.hbm %s1543_s8, %s1408_s13  ;;  %s1430_s12 = int_to_ptr.vmem [resolvable:$true] %s709_s12 }
  0x28   : > { %979 = vmatmul.mubr.msk.bf16.vlgmr.msra.gmra.mxu0 %vm491_vm1, %v467_v5  ;;  %s1087_s17 = scalar_lea.vmem %s1422_s24, 64  ;;  %s1239_s14 = smov [#allocation2]  }
  0x29   : > { %991 = vmatpush3.bf16.msra.mxu0 %v1085_v6  ;;  %987 = vmatmul.mubr.msk.bf16.vlgmr.msra.gmra.mxu1 %vm491_vm1, %v467_v5  ;;  %p1088_p0 = scmp.ne.s32.totalorder %s1422_s24, %s1087_s17  ;;  %s1091_s18 = sshll.u32 %s1239_s14, 4  ;;  %s1092_s18 = int_to_ptr.vmem [resolvable:$false] %s1091_s18 }
  0x2a   : > { %992 = vmatprep.subr.bf16.mxu0 %v1237_v0  ;;  %994 = vmatprep.mubr.msk.bf16.mxu0 %vm1238_vm0, %v1237_v0  ;;  %s1093_s28 = scalar_lea.vmem %s1092_s18, 128  ;;  %p1094_p4 = scmp.lt.s32.totalorder %s1422_s24, %s1092_s18 }
  0x2b   : > { %p1089_p1 = pnand %p1088_p0, %p1345_p3  ;;  %p1095_p5 = scmp.lt.s32.totalorder %s1093_s28, %s1087_s17 }
  0x2d   : > { %993 = vmatpush3.bf16.msra.mxu0 %v1086_v7  ;;  %p1090_p2 = pneg %p1089_p1  ;;  %p1096_p6 = por %p1095_p5, %p1094_p4 }
  0x2f   : > { %p1097_p7 = pnand %p1096_p6, %p1090_p2 }
  0x30   : > { %995 = vmatmul.mubr.msk.bf16.vlgmr.msra.gmra.mxu0 %vm491_vm1, %v467_v5 }
  0xe8   : > { %v529_v10 = vpop.f32.mrf.mxu0 }
  0xe9   : > { %v530_v11 = vadd.f32 %v939_v8, %v529_v10  ;;  %v592_v12 = vpop.f32.mrf.mxu1 }
  0xea   : > { %v980_v13 = vpop.f32.mrf.mxu0  ;;  %v593_v14 = vadd.f32 %v943_v9, %v592_v12 }
  0xeb   : > { %v661_v15 = vpack.c.bf16 %v530_v11, %v530_v11  ;;  %v988_v16 = vpop.f32.mrf.mxu1 }
  0xec   : > { %v664_v17 = vpack.c.bf16 %v593_v14, %v593_v14  ;;  %v532_v18 = vpop.f32.mrf.mxu0 }
  0xed   : > { %v595_v19 = vpop.f32.mrf.mxu1  ;;  %663 = vst.msk [vmem:[%s423_s26] sm:$0xf] %vm662_vm2, %v661_v15 }
  0xee   : > { %v981_v20 = vpop.f32.mrf.mxu0  ;;  %665 = vst.msk [vmem:[%s430_s20] sm:$0xf] %vm662_vm2, %v664_v17 }
  0xef   : > { %1100 = shalt.err (!%p1097_p7)
}
  0xf0   : > { %s1101_s26 = scalar_lea.hbm %s1420_s23, 64  ;;  %s1105_s20 = scalar_lea.hbm %s1542_s7, 512 }
  0xf1   : > { %p1102_p9 = scmp.ne.s32.totalorder %s1420_s23, %s1101_s26  ;;  %p1106_p12 = scmp.lt.s32.totalorder %s1420_s23, %s1542_s7 }
  0xf2   : > { %p1107_p13 = scmp.lt.s32.totalorder %s1105_s20, %s1101_s26 }
  0xf3   : > { %p1103_p10 = pnand %p1102_p9, %p1345_p3 }
  0xf4   : > { %p1108_p0 = por %p1107_p13, %p1106_p12 }
  0xf5   : > { %p1104_p11 = pneg %p1103_p10 }
  0xf7   : > { %p1109_p1 = pnand %p1108_p0, %p1104_p11 }
  0xf9   : > { %1112 = shalt.err (!%p1109_p1)
}
  0xfa   : > { %998 = dma.vmem_to_hbm [thread:$0]  (%p1345_p3), %s1422_s24, 64, %s1420_s23, %s669_s15   ;;  %v989_v22 = vpop.f32.mrf.mxu1 }
  0xfb   : > { %s674_s17 = scalar_lea.sflag [#allocation5], %s1406_s25  ;;  %s1113_s18 = scalar_lea.vmem %s1430_s12, 64 }
  0xfc   : > { %p1114_p2 = scmp.ne.s32.totalorder %s1430_s12, %s1113_s18  ;;  %s1240_s28 = smov [#allocation4]  }
  0xfd   : > { %s1117_s26 = sshll.u32 %s1240_s28, 4  ;;  %s1118_s26 = int_to_ptr.vmem [resolvable:$false] %s1117_s26 }
  0xfe   : > { %p1115_p4 = pnand %p1114_p2, %p1345_p3  ;;  %s1119_s11 = scalar_lea.vmem %s1118_s26, 128 }
  0xff   : > { %p1120_p6 = scmp.lt.s32.totalorder %s1430_s12, %s1118_s26  ;;  %p1121_p7 = scmp.lt.s32.totalorder %s1119_s11, %s1113_s18 }
 0x100   : > { %p1116_p5 = pneg %p1115_p4 }
 0x101   : > { %p1122_p9 = por %p1121_p7, %p1120_p6 }
 0x103   : > { %p1123_p10 = pnand %p1122_p9, %p1116_p5 }
 0x105   : > { %1126 = shalt.err (!%p1123_p10)
}
 0x106   : > { %s1127_s24 = scalar_lea.hbm %s1428_s21, 64  ;;  %s1131_s19 = scalar_lea.hbm %s1543_s8, 512 }
 0x107   : > { %p1128_p11 = scmp.ne.s32.totalorder %s1428_s21, %s1127_s24  ;;  %p1132_p0 = scmp.lt.s32.totalorder %s1428_s21, %s1543_s8 }
 0x108   : > { %p1133_p1 = scmp.lt.s32.totalorder %s1131_s19, %s1127_s24 }
 0x109   : > { %p1129_p12 = pnand %p1128_p11, %p1345_p3 }
 0x10a   : > { %p1134_p2 = por %p1133_p1, %p1132_p0 }
 0x10b   : > { %p1130_p13 = pneg %p1129_p12 }
 0x10d   : > { %p1135_p4 = pnand %p1134_p2, %p1130_p13 }
 0x10f   : > { %1138 = shalt.err (!%p1135_p4)
}
 0x110   : > { %999 = dma.vmem_to_hbm [thread:$0]  (%p1345_p3), %s1430_s12, 64, %s1428_s21, %s674_s17   ;;  %v655_v23 = vpop.f32.mrf.mxu0 }
 0x111   : > { %s437_s14 = scalar_lea.vmem [#allocation6], %s1401_s29  ;;  %v656_v24 = vadd.f32 %v947_v21, %v655_v23  ;;  %s1484_s11 = scalar_lea.hbm %s1544_s9, %s1408_s13 }
 0x112   : > { %s724_s18 = sshll.u32 %s437_s14, 4  ;;  %v996_v25 = vpop.f32.mrf.mxu0  ;;  %s1241_s29 = smov [#allocation6]   ;;  %s725_s18 = int_to_ptr.vmem [resolvable:$true] %s724_s18 }
 0x113   : > { %v666_v26 = vpack.c.bf16 %v656_v24, %v656_v24  ;;  %s1139_s24 = scalar_lea.vmem %s725_s18, 64  ;;  %s1143_s12 = sshll.u32 %s1241_s29, 4  ;;  %s1144_s12 = int_to_ptr.vmem [resolvable:$false] %s1143_s12 }
 0x114   : > { %v658_v27 = vpop.f32.mrf.mxu0  ;;  %p1140_p5 = scmp.ne.s32.totalorder %s725_s18, %s1139_s24  ;;  %s1145_s21 = scalar_lea.vmem %s1144_s12, 128 }
 0x115   : > { %667 = vst.msk [vmem:[%s437_s14] sm:$0xf] %vm662_vm2, %v666_v26  ;;  %p1146_p9 = scmp.lt.s32.totalorder %s725_s18, %s1144_s12  ;;  %p1147_p10 = scmp.lt.s32.totalorder %s1145_s21, %s1139_s24 }
 0x116   : > { %v997_v28 = vpop.f32.mrf.mxu0  ;;  %p1141_p6 = pnand %p1140_p5, %p1345_p3 }
 0x117   : > { %p1148_p11 = por %p1147_p10, %p1146_p9 }
 0x118   : > { %p1142_p7 = pneg %p1141_p6 }
 0x11a   : > { %p1149_p12 = pnand %p1148_p11, %p1142_p7 }
 0x11c   : > { %1152 = shalt.err (!%p1149_p12)
}
 0x11d   : > { %s1153_s13 = scalar_lea.hbm %s1484_s11, 64  ;;  %s1157_s19 = scalar_lea.hbm %s1544_s9, 512 }
 0x11e   : > { %p1154_p13 = scmp.ne.s32.totalorder %s1484_s11, %s1153_s13  ;;  %p1158_p2 = scmp.lt.s32.totalorder %s1484_s11, %s1544_s9 }
 0x11f   : > { %p1159_p4 = scmp.lt.s32.totalorder %s1157_s19, %s1153_s13 }
 0x120   : > { %p1155_p0 = pnand %p1154_p13, %p1345_p3 }
 0x121   : > { %p1160_p5 = por %p1159_p4, %p1158_p2 }
 0x122   : > { %p1156_p1 = pneg %p1155_p0 }
 0x124   : > { %p1161_p6 = pnand %p1160_p5, %p1156_p1 }
 0x126   : > { %1164 = shalt.err (!%p1161_p6)
}
 0x127   : > { %1000 = dma.vmem_to_hbm [thread:$0]  (%p1345_p3), %s725_s18, 64, %s1484_s11, %s674_s17  }
 0x128 PF: > { %p1014_p7 = scmp.ge.s32.totalorder %s1235_s16, 2  ;;  %s736_s28 = sand.u32 1, %s1207_s30  }
 0x129   : > { %s737_s26 = scalar_lea.sflag [#allocation3], %s736_s28 }
 0x12a   : > { %p1005_p9 = pnand %p1014_p7, %p1356_p8 }
 0x12c   : > { %p1006_p10 = pneg %p1005_p9 }
 0x12e   : > { %1198 = dma.done.wait (%p1006_p10), %s737_s26, 64  }
 0x12f   : > { %1200 = vsyncadd (%p1006_p10), %s737_s26, 4294967232  ;;  %s1564_s24 = sadd.s32 4294967294, %s1235_s16  }
 0x130   : > { %s745_s29 = sand.u32 1, %s1564_s24  }
 0x131   : > { %s746_s22 = scalar_lea.sflag [#allocation5], %s745_s29 }
 0x132   : > { %1202 = dma.done.wait (%p1006_p10), %s746_s22, 128  }
 0x133   : > { %1204 = vsyncadd (%p1006_p10), %s746_s22, 4294967168  ;;  %s26_s16 = sadd.s32 1, %s1235_s16   ;;  %s1565_s25 = sld [smem:[#allocation9_spill]] }
 0x134   : > { %p23_p3 = scmp.ge.s32.totalorder %s26_s16, 10   ;;  %s1566_s11 = sld [smem:[#allocation15_spill]] }
 0x135   : > { %s1567_s12 = sld [smem:[#allocation10_spill]]  ;;  %s1571_s30 = smov %s1211_s10 }
 0x136   : > { %s1568_s13 = sld [smem:[#allocation11_spill]]  ;;  %25 = sbr.rel (!%p23_p3) target bundleno = 7 (0x7), region = 133 }
 0x137   : > { %s1569_s14 = sld [smem:[#allocation12_spill]] }
 0x138   : > { %s1570_s15 = sld [smem:[#allocation13_spill]] }
 0x139   : > { %s1572_s10 = smov %s1565_s25 }
 0x13b   :  { %760 = vsyncpa [#allocation3], 1 }
 0x13c   :  { %762 = vsyncpa [#allocation3 + $0x1], 1 }
 0x13d   :  { %763 = vsyncpa [#allocation5], 1 }
 0x13e   :  { %765 = vsyncpa [#allocation5 + $0x1], 1 }

</bundles_post_ra>
